<compile_context>
chip_gen: v7x
topology: tpu7x:2x2x1
jax: 0.10.0
libtpu: 0.0.40
codegen_flags: <defaults>
</compile_context>

<pallas_src>
import functools
import math

import jax
import jax.numpy as jnp
from jax.experimental import pallas as pl
from jax.experimental.pallas import tpu as pltpu

HID = 32            # per-head hidden width (fused hidden lives in lanes 0..63)
LANES = 128         # lane-dense working width for the fused weights
BIAS_ROWS = 8       # sublane-aligned bias region (rows 0..2 used)


def _round_up(x, m):
    return ((x + m - 1) // m) * m


def _cdiv(a, b):
    return (a + b - 1) // b


def a2c_fused_kernel(x_ref, params_ref, val_ref, logit_ref):
    """One row-tile of the fused critic+actor forward.

    x_ref      : [TM, F]             input rows (F = true n_features, unpadded)
    params_ref : [f_pad+264, 128]    packed weight/bias slab (resident, 1 DMA)
    val_ref    : [TM, 1]             state values
    logit_ref  : [TM, A]             action logits
    """
    n_features = x_ref.shape[-1]
    n_actions = logit_ref.shape[-1]
    f_pad = params_ref.shape[0] - (2 * LANES + BIAS_ROWS)

    x = x_ref[...]

    # Static slices into the packed slab (all region offsets are multiples of 8).
    w1 = params_ref[0:n_features, :]                       # [F, 128]
    w2 = params_ref[f_pad:f_pad + LANES, :]                # [128, 128] block-diag
    w3 = params_ref[f_pad + LANES:f_pad + 2 * LANES, :]    # [128, 128]
    ob = f_pad + 2 * LANES
    b1 = params_ref[ob + 0:ob + 1, :]                      # [1, 128]
    b2 = params_ref[ob + 1:ob + 2, :]                      # [1, 128]
    b3 = params_ref[ob + 2:ob + 3, :]                      # [1, 128]

    hi = jax.lax.Precision.HIGHEST

    # Layer 1: both heads at once (critic -> lanes 0:32, actor -> lanes 32:64).
    h = jnp.dot(x, w1, precision=hi, preferred_element_type=jnp.float32) + b1
    h = jnp.maximum(h, 0.0)
    # Layer 2: block-diagonal keeps the two heads independent.
    h = jnp.dot(h, w2, precision=hi, preferred_element_type=jnp.float32) + b2
    h = jnp.maximum(h, 0.0)
    # Layer 3: value in lane 0, logits in lanes 1..A.
    out = jnp.dot(h, w3, precision=hi, preferred_element_type=jnp.float32) + b3

    val_ref[...] = out[:, 0:1]
    logit_ref[...] = out[:, 1:1 + n_actions]


def pack_params(critic_params, actor_params, n_features, n_actions):
    """Pack all 12 weight/bias tensors into one [f_pad+264, 128] f32 slab.

    Weights are stored pre-transposed as [in_features, out_features] so the
    kernel computes x @ W + b (== PyTorch's x @ W.T + b).

    Call this ONCE (and again only after the optimizer updates the weights);
    it is intentionally outside the per-forward hot path.
    """
    f_pad = _round_up(max(n_features, 8), 8)
    rows = f_pad + 2 * LANES + BIAS_ROWS
    slab = jnp.zeros((rows, LANES), jnp.float32)

    (w1c, b1c), (w2c, b2c), (w3c, b3c) = critic_params
    (w1a, b1a), (w2a, b2a), (w3a, b3a) = actor_params

    # Layer 1: [F, 128]  (critic cols 0:32, actor cols 32:64)
    slab = slab.at[0:n_features, 0:HID].set(w1c)
    slab = slab.at[0:n_features, HID:2 * HID].set(w1a)
    # Layer 2: [128, 128] block-diagonal
    o2 = f_pad
    slab = slab.at[o2 + 0:o2 + HID, 0:HID].set(w2c)
    slab = slab.at[o2 + HID:o2 + 2 * HID, HID:2 * HID].set(w2a)
    # Layer 3: [128, 128]  (critic -> col 0, actor -> cols 1..A)
    o3 = f_pad + LANES
    slab = slab.at[o3 + 0:o3 + HID, 0:1].set(w3c)
    slab = slab.at[o3 + HID:o3 + 2 * HID, 1:1 + n_actions].set(w3a)
    # Biases: three [1,128] rows
    ob = f_pad + 2 * LANES
    slab = slab.at[ob + 0, 0:HID].set(b1c)
    slab = slab.at[ob + 0, HID:2 * HID].set(b1a)
    slab = slab.at[ob + 1, 0:HID].set(b2c)
    slab = slab.at[ob + 1, HID:2 * HID].set(b2a)
    slab = slab.at[ob + 2, 0].set(b3c[0])
    slab = slab.at[ob + 2, 1:1 + n_actions].set(b3a)
    return slab


@functools.partial(jax.jit, static_argnames=("n_actions",))
def a2c_forward(x, slab, *, n_actions):
    """x: [n_envs, n_features] f32, slab: packed params.

    Returns (values [n_envs, 1], logits [n_envs, n_actions]).
    """
    n_envs, n_features = x.shape
    rows = slab.shape[0]

    # Row tiling:
    #  - small/medium batches: one block covering the whole batch (no row
    #    padding, one grid step, minimal latency).
    #  - large batches: >=2 "parallel" steps of <=2048 rows each, so v7x's two
    #    TensorCores both get work and per-step overhead stays amortized.
    if n_envs <= 1024:
        block_m = n_envs
        n_pad = n_envs
    else:
        num_blocks = max(2, _cdiv(n_envs, 2048))
        block_m = _round_up(_cdiv(n_envs, num_blocks), 8)
        n_pad = _round_up(n_envs, block_m)
    grid_m = n_pad // block_m

    x_p = x if n_pad == n_envs else jnp.pad(x, ((0, n_pad - n_envs), (0, 0)))

    flops = 2 * n_pad * (n_features * LANES + LANES * LANES + LANES * LANES)
    bytes_accessed = 4 * (x_p.size + slab.size + n_pad * (1 + n_actions))

    values, logits = pl.pallas_call(
        a2c_fused_kernel,
        out_shape=(
            jax.ShapeDtypeStruct((n_pad, 1), jnp.float32),
            jax.ShapeDtypeStruct((n_pad, n_actions), jnp.float32),
        ),
        grid_spec=pltpu.PrefetchScalarGridSpec(
            num_scalar_prefetch=0,
            grid=(grid_m,),
            in_specs=[
                # x row tile; last dim == full array dim (no feature padding).
                pl.BlockSpec((block_m, n_features), lambda i: (i, 0)),
                # resident packed weight slab (constant index_map -> 1 DMA).
                pl.BlockSpec((rows, LANES), lambda i: (0, 0)),
            ],
            out_specs=(
                pl.BlockSpec((block_m, 1), lambda i: (i, 0)),
                pl.BlockSpec((block_m, n_actions), lambda i: (i, 0)),
            ),
        ),
        compiler_params=pltpu.CompilerParams(
            dimension_semantics=("parallel",),
            vmem_limit_bytes=32 * 1024 * 1024,
        ),
        cost_estimate=pl.CostEstimate(
            flops=flops, transcendentals=0, bytes_accessed=bytes_accessed
        ),
    )(x_p, slab)

    if n_pad != n_envs:
        values = values[:n_envs]
        logits = logits[:n_envs]
    return values, logits


def init_linear(key, fan_in, fan_out):
    """torch.nn.Linear-style init (uniform +/- 1/sqrt(fan_in)); W as [in, out]."""
    kw, kb = jax.random.split(key)
    bound = 1.0 / math.sqrt(fan_in)
    w = jax.random.uniform(kw, (fan_in, fan_out), jnp.float32, -bound, bound)
    b = jax.random.uniform(kb, (fan_out,), jnp.float32, -bound, bound)
    return w, b


def jax_reference(x, critic_params, actor_params):
    hi = jax.lax.Precision.HIGHEST

    def mlp(h, params):
        for i, (w, b) in enumerate(params):
            h = jnp.dot(h, w, precision=hi) + b
            if i < len(params) - 1:
                h = jnp.maximum(h, 0.0)
        return h

    return mlp(x, critic_params), mlp(x, actor_params)


if __name__ == "__main__":
    n_envs = 8
    n_features = 16
    n_actions = 4

    key = jax.random.PRNGKey(0)
    keys = jax.random.split(key, 7)

    critic_params = [
        init_linear(keys[0], n_features, 32),
        init_linear(keys[1], 32, 32),
        init_linear(keys[2], 32, 1),
    ]
    actor_params = [
        init_linear(keys[3], n_features, 32),
        init_linear(keys[4], 32, 32),
        init_linear(keys[5], 32, n_actions),
    ]

    x = jax.random.normal(keys[6], (n_envs, n_features), jnp.float32)

    # Pack once, outside the per-call hot path (re-run only after weight updates).
    slab = pack_params(critic_params, actor_params, n_features, n_actions)

    values, logits = a2c_forward(x, slab, n_actions=n_actions)
    jax.block_until_ready((values, logits))

    ref_values, ref_logits = jax_reference(x, critic_params, actor_params)
    assert values.shape == (n_envs, 1)
    assert logits.shape == (n_envs, n_actions)
    assert jnp.allclose(values, ref_values, atol=1e-5, rtol=1e-5)
    assert jnp.allclose(logits, ref_logits, atol=1e-5, rtol=1e-5)

    # TODO(synk): select_action (Categorical sampling / entropy) and get_losses
    # (GAE backward recursion) are acting/training utilities outside the forward
    # hot path; they are not implemented in-kernel here.
    print("KERNEL_OK")
</pallas_src>

<mosaic_0001>
module attributes {stable_mosaic.version = 11 : i64} {
  func.func @a2c_fused_kernel(%arg0: i32, %arg1: memref<8x16xf32, #tpu.memory_space<vmem>>, %arg2: memref<280x128xf32, #tpu.memory_space<vmem>>, %arg3: memref<8x1xf32, #tpu.memory_space<vmem>>, %arg4: memref<8x4xf32, #tpu.memory_space<vmem>>) attributes {dimension_semantics = [#tpu.dimension_semantics<parallel>], iteration_bounds = array<i64: 1>, scalar_prefetch = 0 : i64, scratch_operands = 0 : i64, tpu.core_type = #tpu.core_type<tc>, window_params = [{transform_indices = @transform_0, window_bounds = array<i64: 8, 16>}, {pipeline_mode = #tpu.pipeline_mode<synchronous>, transform_indices = @transform_1, window_bounds = array<i64: 280, 128>}, {transform_indices = @transform_2, window_bounds = array<i64: 8, 1>}, {transform_indices = @transform_3, window_bounds = array<i64: 8, 4>}]} {
    %c0 = arith.constant 0 : index
    %c0_0 = arith.constant 0 : index
    %0 = vector.load %arg1[%c0, %c0_0] : memref<8x16xf32, #tpu.memory_space<vmem>>, vector<8x16xf32>
    %c0_1 = arith.constant 0 : index
    %c0_2 = arith.constant 0 : index
    %1 = vector.load %arg2[%c0_1, %c0_2] : memref<280x128xf32, #tpu.memory_space<vmem>>, vector<16x128xf32>
    %c16 = arith.constant 16 : index
    %c0_3 = arith.constant 0 : index
    %2 = vector.load %arg2[%c16, %c0_3] : memref<280x128xf32, #tpu.memory_space<vmem>>, vector<128x128xf32>
    %c144 = arith.constant 144 : index
    %c0_4 = arith.constant 0 : index
    %3 = vector.load %arg2[%c144, %c0_4] : memref<280x128xf32, #tpu.memory_space<vmem>>, vector<128x128xf32>
    %c272 = arith.constant 272 : index
    %c0_5 = arith.constant 0 : index
    %4 = vector.load %arg2[%c272, %c0_5] : memref<280x128xf32, #tpu.memory_space<vmem>>, vector<1x128xf32>
    %c273 = arith.constant 273 : index
    %c0_6 = arith.constant 0 : index
    %5 = vector.load %arg2[%c273, %c0_6] : memref<280x128xf32, #tpu.memory_space<vmem>>, vector<1x128xf32>
    %c274 = arith.constant 274 : index
    %c0_7 = arith.constant 0 : index
    %6 = vector.load %arg2[%c274, %c0_7] : memref<280x128xf32, #tpu.memory_space<vmem>>, vector<1x128xf32>
    %cst = arith.constant dense<0.000000e+00> : vector<8x128xf32>
    %7 = tpu.matmul %0, %1, %cst {dimension_numbers = #tpu.dot_dimension_numbers<[1], [0], [0], [1], [0, 0, 1, 1], [], []>, precision = #tpu.contract_precision<fp32>} : vector<8x16xf32>, vector<16x128xf32>, vector<8x128xf32> -> vector<8x128xf32>
    %8 = vector.broadcast %4 : vector<1x128xf32> to vector<8x128xf32>
    %9 = arith.addf %7, %8 : vector<8x128xf32>
    %cst_8 = arith.constant 0.000000e+00 : f32
    %10 = vector.broadcast %cst_8 : f32 to vector<8x128xf32>
    %11 = arith.maximumf %9, %10 : vector<8x128xf32>
    %cst_9 = arith.constant dense<0.000000e+00> : vector<8x128xf32>
    %12 = tpu.matmul %11, %2, %cst_9 {dimension_numbers = #tpu.dot_dimension_numbers<[1], [0], [0], [1], [0, 0, 1, 1], [], []>, precision = #tpu.contract_precision<fp32>} : vector<8x128xf32>, vector<128x128xf32>, vector<8x128xf32> -> vector<8x128xf32>
    %13 = vector.broadcast %5 : vector<1x128xf32> to vector<8x128xf32>
    %14 = arith.addf %12, %13 : vector<8x128xf32>
    %cst_10 = arith.constant 0.000000e+00 : f32
    %15 = vector.broadcast %cst_10 : f32 to vector<8x128xf32>
    %16 = arith.maximumf %14, %15 : vector<8x128xf32>
    %cst_11 = arith.constant dense<0.000000e+00> : vector<8x128xf32>
    %17 = tpu.matmul %16, %3, %cst_11 {dimension_numbers = #tpu.dot_dimension_numbers<[1], [0], [0], [1], [0, 0, 1, 1], [], []>, precision = #tpu.contract_precision<fp32>} : vector<8x128xf32>, vector<128x128xf32>, vector<8x128xf32> -> vector<8x128xf32>
    %18 = vector.broadcast %6 : vector<1x128xf32> to vector<8x128xf32>
    %19 = arith.addf %17, %18 : vector<8x128xf32>
    %20 = vector.extract_strided_slice %19 {offsets = [0, 0], sizes = [8, 1], strides = [1, 1]} : vector<8x128xf32> to vector<8x1xf32>
    %c0_12 = arith.constant 0 : index
    %c0_13 = arith.constant 0 : index
    %21 = vector.load %arg3[%c0_12, %c0_13] : memref<8x1xf32, #tpu.memory_space<vmem>>, vector<8x1xf32>
    tpu.vector_store %arg3[%c0_12, %c0_13], %20 {strides = array<i32>} : memref<8x1xf32, #tpu.memory_space<vmem>>, vector<8x1xf32>,
    %22 = vector.extract_strided_slice %19 {offsets = [0, 1], sizes = [8, 4], strides = [1, 1]} : vector<8x128xf32> to vector<8x4xf32>
    %c0_14 = arith.constant 0 : index
    %c0_15 = arith.constant 0 : index
    %23 = vector.load %arg4[%c0_14, %c0_15] : memref<8x4xf32, #tpu.memory_space<vmem>>, vector<8x4xf32>
    tpu.vector_store %arg4[%c0_14, %c0_15], %22 {strides = array<i32>} : memref<8x4xf32, #tpu.memory_space<vmem>>, vector<8x4xf32>,
    return
  }
  func.func @transform_0(%arg0: i32) -> (i32, i32) {
    %c0_i32 = arith.constant 0 : i32
    %c0_i32_0 = arith.constant 0 : i32
    return %arg0, %c0_i32 : i32, i32
  }
  func.func @transform_1(%arg0: i32) -> (i32, i32) {
    %c0_i32 = arith.constant 0 : i32
    %c0_i32_0 = arith.constant 0 : i32
    %c0_i32_1 = arith.constant 0 : i32
    return %c0_i32, %c0_i32_0 : i32, i32
  }
  func.func @transform_2(%arg0: i32) -> (i32, i32) {
    %c0_i32 = arith.constant 0 : i32
    %c0_i32_0 = arith.constant 0 : i32
    return %arg0, %c0_i32 : i32, i32
  }
  func.func @transform_3(%arg0: i32) -> (i32, i32) {
    %c0_i32 = arith.constant 0 : i32
    %c0_i32_0 = arith.constant 0 : i32
    return %arg0, %c0_i32 : i32, i32
  }
}

</mosaic_0001>

<bundles_post_ra>
// kernel: a2c_forward.1
= control target key start
LH: loop header
LB: loop body
LE: loop exit
PB: predicated region body
PF: predicated region fallthrough
CT: control target
= control target key end

     0   :  { %9 = vsyncpa [#allocation3], 0  ;;  %s3557_s0 = inlined_call_operand.hbm [shape: f32[8,16], index: 0, kind: input, shape index: {}]   ;;  %s3558_s1 = inlined_call_operand.hbm [shape: f32[280,128], index: 1, kind: input, shape index: {}]   ;;  %s3559_s2 = inlined_call_operand.vmem [shape: f32[8,1], index: 2, kind: output, shape index: {0}]   ;;  %s3560_s3 = inlined_call_operand.vmem [shape: f32[8,4], index: 3, kind: output, shape index: {1}]  }
   0x1   :  { %10 = vsyncpa [#allocation5], 0  ;;  %s2935_s12 = smov [#allocation2]   ;;  %s2936_s14 = smov [#allocation4]  }
   0x2   :  { %s17_s13 = sshll.u32 %s2935_s12, 4  ;;  %s26_s15 = sshll.u32 %s2936_s14, 4  ;;  %s18_s13 = int_to_ptr.vmem [resolvable:$true] %s17_s13  ;;  %s2963_s15 = int_to_ptr.vmem [resolvable:$true] %s26_s15 }
   0x3   :  { %s2887_s18 = scalar_lea.hbm %s3557_s0, 128 }
   0x4   :  { %p2888_p0 = scmp.ne.s32.totalorder %s3557_s0, %s2887_s18  ;;  %p2891_p1 = scmp.lt.u32.totalorder %s2887_s18, %s3557_s0 }
   0x6   :  { %p2893_p2 = pnand %p2891_p1, %p2888_p0 }
   0x8   :  { %2896 = shalt.err (!%p2893_p2)
}
   0x9   :  { %s2897_s23 = scalar_lea.vmem %s18_s13, 128  ;;  %p2902_p4 = scmp.lt.s32.totalorder %s18_s13, %s18_s13 }
   0xa   :  { %p2898_p3 = scmp.ne.s32.totalorder %s18_s13, %s2897_s23  ;;  %p2903_p5 = scmp.lt.s32.totalorder %s2897_s23, %s2897_s23 }
   0xc   :  { %p2904_p6 = por %p2903_p5, %p2902_p4 }
   0xe   :  { %p2905_p7 = pnand %p2904_p6, %p2898_p3 }
  0x10   :  { %2908 = shalt.err (!%p2905_p7)
}
  0x11   :  { %20 = dma.hbm_to_vmem [thread:$0]  %s3557_s0, 128, %s18_s13, [#allocation3]  }
  0x12   :  { %s2909_s28 = scalar_lea.hbm %s3558_s1, 4480 }
  0x13   :  { %p2910_p8 = scmp.ne.s32.totalorder %s3558_s1, %s2909_s28  ;;  %p2913_p9 = scmp.lt.u32.totalorder %s2909_s28, %s3558_s1 }
  0x15   :  { %p2915_p10 = pnand %p2913_p9, %p2910_p8 }
  0x17   :  { %2918 = shalt.err (!%p2915_p10)
}
  0x18   :  { %s2919_s6 = scalar_lea.vmem %s2963_s15, 4480  ;;  %p2924_p12 = scmp.lt.s32.totalorder %s2963_s15, %s2963_s15 }
  0x19   :  { %p2920_p11 = scmp.ne.s32.totalorder %s2963_s15, %s2919_s6  ;;  %p2925_p13 = scmp.lt.s32.totalorder %s2919_s6, %s2919_s6 }
  0x1b   :  { %p2926_p0 = por %p2925_p13, %p2924_p12 }
  0x1d   :  { %p2927_p1 = pnand %p2926_p0, %p2920_p11 }
  0x1f   :  { %2930 = shalt.err (!%p2927_p1)
}
  0x20   :  { %s2937_s0 = smov 128   ;;  %s2938_s7 = smov 8  }
  0x21   :  { %32 = dma.hbm_to_vmem [thread:$0]  %s3558_s1, 4480, %s2963_s15, [#allocation5], %s2937_s0, %s2937_s0, %s2938_s7  }
  0x22   :  { %2931 = dma.done.wait [#allocation3], 128  }
  0x23   :  { %2932 = vsyncadd [#allocation3], 4294967168 }
  0x24   :  { %2933 = dma.done.wait [#allocation5], 4480  }
  0x25   :  { %2934 = vsyncadd [#allocation5], 4294962816  ;;  %v2939_v0 = vmov 0.0|0.0   ;;  %vm2940_vm0 = vmmov 0   ;;  %v2941_v1 = vmov 0.0   ;;  %vm81_vm1 = vcmask 130048  }
  0x26   :  { %2550 = vmatprep.subr.bf16.mxu0 %v2939_v0  ;;  %2104 = vmatprep.mubr.msk.f32.mxu0 %vm2940_vm0, %v2941_v1  ;;  %v40_v2 = vld [vmem:[#allocation4] sm:$0xff]  ;;  %v41_v3 = vld [vmem:[#allocation4 + $0x8] sm:$0xff]  ;;  %v39_v4 = vld [vmem:[#allocation2] sm:$0xff]  ;;  %vm1836_vm2 = vcmask 7168   ;;  %s2942_s11 = smov 127   ;;  %vm1842_vm3 = vcmask 31744  }
  0x27   :  { %2541 = vmatprep.subr.bf16.mxu1 %v2939_v0  ;;  %2083 = vmatprep.mubr.msk.f32.mxu1 %vm2940_vm0, %v2941_v1  ;;  %v86_v5 = vand.u32 4294901760, %v40_v2  ;;  %v89_v6 = vand.u32 4294901760, %v41_v3  ;;  %v83_v7 = vsel %vm81_vm1, %v39_v4, 0  ;;  %v42_v8 = vld [vmem:[#allocation4 + $0x10] sm:$0xff]  ;;  %v43_v9 = vld [vmem:[#allocation4 + $0x18] sm:$0xff]  ;;  %v44_v10 = vld [vmem:[#allocation4 + $0x20] sm:$0xff] }
  0x28   :  { %v152_v11 = vand.u32 4294901760, %v83_v7  ;;  %v550_v12 = vand.u32 4294901760, %v42_v8  ;;  %v553_v13 = vand.u32 4294901760, %v43_v9  ;;  %v45_v14 = vld [vmem:[#allocation4 + $0x28] sm:$0xff]  ;;  %v556_v18 = vand.u32 4294901760, %v44_v10  ;;  %v46_v19 = vld [vmem:[#allocation4 + $0x30] sm:$0xff] }
  0x29   :  { %v2542_v15 = vpack.c.bf16 %v89_v6, %v86_v5  ;;  %v164_v16 = vsub.f32 %v40_v2, %v86_v5  ;;  %v171_v17 = vsub.f32 %v41_v3, %v89_v6  ;;  %v559_v23 = vand.u32 4294901760, %v45_v14  ;;  %v47_v24 = vld [vmem:[#allocation4 + $0x38] sm:$0xff]  ;;  %v48_v46 = vld [vmem:[#allocation4 + $0x40] sm:$0xff]  ;;  %v49_v47 = vld [vmem:[#allocation4 + $0x48] sm:$0xff] }
  0x2a   :  { %v153_v20 = vsub.f32 %v83_v7, %v152_v11  ;;  %v3000_v21 = vsub.f32 %v42_v8, %v550_v12  ;;  %v3002_v22 = vsub.f32 %v43_v9, %v553_v13  ;;  %v3006_v28 = vsub.f32 %v44_v10, %v556_v18  ;;  %v50_v51 = vld [vmem:[#allocation4 + $0x50] sm:$0xff]  ;;  %v51_v52 = vld [vmem:[#allocation4 + $0x58] sm:$0xff]  ;;  %v52_v58 = vld [vmem:[#allocation4 + $0x60] sm:$0xff] }
  0x2b   :  { %2552 = vmatpush3.bf16.msra.mxu0 %v2542_v15  ;;  %2543 = vmatpush3.bf16.msra.mxu1 %v2542_v15  ;;  %v165_v25 = vand.u32 4294901760, %v164_v16  ;;  %v172_v26 = vand.u32 4294901760, %v171_v17  ;;  %v3008_v29 = vsub.f32 %v45_v14, %v559_v23  ;;  %v562_v30 = vand.u32 4294901760, %v46_v19  ;;  %v53_v59 = vld [vmem:[#allocation4 + $0x68] sm:$0xff]  ;;  %v54_v63 = vld [vmem:[#allocation4 + $0x70] sm:$0xff]  ;;  %v55_v2 = vld [vmem:[#allocation4 + $0x78] sm:$0xff] }
  0x2c   :  { %v154_v27 = vand.u32 4294901760, %v153_v20  ;;  %2544 = vmatprep.subr.bf16.mxu1 %v2939_v0  ;;  %2553 = vmatprep.subr.bf16.mxu0 %v2939_v0  ;;  %v565_v34 = vand.u32 4294901760, %v47_v24  ;;  %v2548_v42 = vpack.c.bf16 %v171_v17, %v164_v16  ;;  %v3026_v43 = vpack.c.bf16 %v553_v13, %v550_v12  ;;  %v56_v6 = vld [vmem:[#allocation4 + $0x80] sm:$0xff]  ;;  %v57_v7 = vld [vmem:[#allocation4 + $0x88] sm:$0xff] }
  0x2d   :  { %v166_v31 = vsub.f32 %v164_v16, %v165_v25  ;;  %v173_v32 = vsub.f32 %v171_v17, %v172_v26  ;;  %v2554_v33 = vpack.c.bf16 %v172_v26, %v165_v25  ;;  %v3010_v36 = vsub.f32 %v46_v19, %v562_v30 }
  0x2e   :  { %2105 = vmatmul.mubr.f32.vlgmr.msra.gmra.mrb[0].mxu0 %v154_v27  ;;  %v155_v35 = vsub.f32 %v153_v20, %v154_v27  ;;  %v3014_v39 = vsub.f32 %v47_v24, %v565_v34  ;;  %v3031_v44 = vpack.c.bf16 %v559_v23, %v556_v18  ;;  %v3037_v45 = vpack.c.bf16 %v565_v34, %v562_v30 }
  0x2f   :  { %v167_v37 = vand.u32 4294901760, %v166_v31  ;;  %v174_v38 = vand.u32 4294901760, %v173_v32  ;;  %2555 = vmatpush3.bf16.msra.mxu0 %v2554_v33  ;;  %2111 = vmatprep.mubr.msk.f32.mxu0 %vm2940_vm0, %v2941_v1  ;;  %v568_v48 = vand.u32 4294901760, %v48_v46  ;;  %v571_v49 = vand.u32 4294901760, %v49_v47 }
  0x30   :  { %v156_v40 = vand.u32 4294901760, %v155_v35  ;;  %2556 = vmatprep.subr.bf16.mxu0 %v2939_v0  ;;  %v574_v55 = vand.u32 4294901760, %v50_v51  ;;  %v577_v56 = vand.u32 4294901760, %v51_v52  ;;  %v580_v60 = vand.u32 4294901760, %v52_v58 }
  0x31   :  { %v2545_v41 = vpack.c.bf16 %v174_v38, %v167_v37  ;;  %v3042_v50 = vpack.c.bf16 %v571_v49, %v568_v48  ;;  %v3045_v53 = vsub.f32 %v48_v46, %v568_v48  ;;  %v3047_v54 = vsub.f32 %v49_v47, %v571_v49 }
  0x32   :  { %2084 = vmatmul.mubr.f32.vlgmr.msra.gmra.mrb[0].mxu1 %v156_v40  ;;  %v3050_v57 = vpack.c.bf16 %v577_v56, %v574_v55  ;;  %v583_v61 = vand.u32 4294901760, %v53_v59  ;;  %v586_v3 = vand.u32 4294901760, %v54_v63  ;;  %v589_v4 = vand.u32 4294901760, %v55_v2 }
  0x33   :  { %2546 = vmatpush3.bf16.msra.mxu1 %v2545_v41  ;;  %2090 = vmatprep.mubr.msk.f32.mxu1 %vm2940_vm0, %v2941_v1  ;;  %v592_v8 = vand.u32 4294901760, %v56_v6  ;;  %v595_v9 = vand.u32 4294901760, %v57_v7  ;;  %v643_v10 = vand.u32 4294901760, %v3000_v21  ;;  %v3064_v12 = vsub.f32 %v50_v51, %v574_v55 }
  0x34   :  { %2547 = vmatprep.subr.bf16.mxu1 %v2939_v0  ;;  %v3054_v62 = vpack.c.bf16 %v583_v61, %v580_v60  ;;  %v3058_v5 = vpack.c.bf16 %v589_v4, %v586_v3  ;;  %v3066_v13 = vsub.f32 %v51_v52, %v577_v56  ;;  %v3068_v14 = vsub.f32 %v52_v58, %v580_v60 }
  0x35   :  { %v3072_v16 = vsub.f32 %v54_v63, %v586_v3  ;;  %v3074_v17 = vsub.f32 %v55_v2, %v589_v4  ;;  %v3076_v18 = vpack.c.bf16 %v595_v9, %v592_v8  ;;  %v3078_v19 = vsub.f32 %v56_v6, %v592_v8 }
  0x36   :  { %2112 = vmatmul.mubr.f32.vlgmr.msra.gmra.mrb[0].mxu0 %v152_v11  ;;  %v644_v23 = vsub.f32 %v3000_v21, %v643_v10  ;;  %v657_v25 = vand.u32 4294901760, %v3006_v28  ;;  %v664_v26 = vand.u32 4294901760, %v3008_v29  ;;  %v3572_v37 = vand.u32 4294901760, %v3010_v36 }
  0x37   :  { %2558 = vmatpush3.bf16.msra.mxu0 %v2542_v15  ;;  %2118 = vmatprep.mubr.msk.f32.mxu0 %vm2940_vm0, %v2941_v1  ;;  %v3070_v15 = vsub.f32 %v53_v59, %v583_v61  ;;  %v3571_v38 = vand.u32 4294901760, %v3014_v39  ;;  %v3570_v48 = vand.u32 4294901760, %v3045_v53  ;;  %v3569_v49 = vand.u32 4294901760, %v3047_v54 }
  0x38   :  { %2703 = vmatprep.subr.bf16.mxu0 %v2939_v0  ;;  %v645_v27 = vand.u32 4294901760, %v644_v23  ;;  %v658_v31 = vsub.f32 %v3006_v28, %v657_v25  ;;  %v665_v32 = vsub.f32 %v3008_v29, %v664_v26  ;;  %v672_v41 = vsub.f32 %v3010_v36, %v3572_v37 }
  0x39   :  { %v686_v52 = vsub.f32 %v3045_v53, %v3570_v48  ;;  %v693_v55 = vsub.f32 %v3047_v54, %v3569_v49  ;;  %v3568_v59 = vand.u32 4294901760, %v3064_v12  ;;  %v3567_v60 = vand.u32 4294901760, %v3066_v13 }
  0x3a   :  { %2091 = vmatmul.mubr.f32.vlgmr.msra.gmra.mrb[0].mxu1 %v152_v11  ;;  %v659_v34 = vand.u32 4294901760, %v658_v31  ;;  %v666_v35 = vand.u32 4294901760, %v665_v32  ;;  %v673_v46 = vand.u32 4294901760, %v672_v41  ;;  %v3566_v6 = vand.u32 4294901760, %v3068_v14 }
  0x3b   :  { %2549 = vmatpush3.bf16.msra.mxu1 %v2548_v42  ;;  %2097 = vmatprep.mubr.msk.f32.mxu1 %vm2940_vm0, %v2941_v1  ;;  %v679_v42 = vsub.f32 %v3014_v39, %v3571_v38  ;;  %v687_v56 = vand.u32 4294901760, %v686_v52  ;;  %v694_v58 = vand.u32 4294901760, %v693_v55  ;;  %v700_v63 = vsub.f32 %v3064_v12, %v3568_v59  ;;  %v67_v59 = vld [vmem:[#allocation4 + $0xd8] sm:$0xff] }
  0x3c   :  { %2559 = vmatprep.subr.bf16.mxu1 %v2939_v0  ;;  %v3102_v40 = vpack.c.bf16 %v666_v35, %v659_v34  ;;  %v707_v2 = vsub.f32 %v3066_v13, %v3567_v60  ;;  %v3563_v31 = vand.u32 4294901760, %v3074_v17 }
  0x3d   :  { %v680_v47 = vand.u32 4294901760, %v679_v42  ;;  %v2593_v61 = vpack.c.bf16 %v694_v58, %v687_v56  ;;  %v701_v3 = vand.u32 4294901760, %v700_v63 }
  0x3e   :  { %2119 = vmatmul.mubr.f32.vlgmr.msra.gmra.mrb[0].mxu0 %v152_v11  ;;  %v650_v11 = vand.u32 4294901760, %v3002_v22  ;;  %v708_v4 = vand.u32 4294901760, %v707_v2  ;;  %v735_v35 = vsub.f32 %v3074_v17, %v3563_v31 }
  0x3f   :  { %2363 = vmatprep.mubr.msk.f32.mxu0 %vm2940_vm0, %v2941_v1  ;;  %v2590_v51 = vpack.c.bf16 %v680_v47, %v673_v46  ;;  %v3562_v46 = vand.u32 4294901760, %v3078_v19 }
  0x40   :  { %v651_v24 = vsub.f32 %v3002_v22, %v650_v11  ;;  %v2596_v8 = vpack.c.bf16 %v708_v4, %v701_v3  ;;  %v736_v42 = vand.u32 4294901760, %v735_v35  ;;  %v2608_v3 = vpack.c.bf16 %v3002_v22, %v3000_v21 }
  0x41   :  { %v742_v55 = vsub.f32 %v3078_v19, %v3562_v46  ;;  %v2611_v4 = vpack.c.bf16 %v3008_v29, %v3006_v28  ;;  %v3577_v21 = vand.u32 4294901760, %v3010_v36  ;;  %v3578_v22 = vand.u32 4294901760, %v3014_v39 }
  0x42   :  { %2098 = vmatmul.mubr.f32.vlgmr.msra.gmra.mrb[0].mxu1 %v153_v20  ;;  %v3080_v20 = vsub.f32 %v57_v7, %v595_v9  ;;  %v652_v30 = vand.u32 4294901760, %v651_v24  ;;  %v3565_v7 = vand.u32 4294901760, %v3070_v15  ;;  %v714_v9 = vsub.f32 %v3068_v14, %v3566_v6 }
  0x43   :  { %2561 = vmatpush3.bf16.msra.mxu1 %v3026_v43  ;;  %2153 = vmatprep.mubr.msk.f32.mxu1 %vm2940_vm0, %v2941_v1  ;;  %v743_v58 = vand.u32 4294901760, %v742_v55  ;;  %v1854_v55 = vld [vmem:[#allocation4 + $0x110] ss:$0 sm:$0xff]  ;;  %v3580_v28 = vand.u32 4294901760, %v3047_v54 }
  0x44   :  { %2562 = vmatprep.subr.bf16.mxu1 %v2939_v0  ;;  %v3098_v33 = vpack.c.bf16 %v652_v30, %v645_v27  ;;  %v721_v23 = vsub.f32 %v3070_v15, %v3565_v7  ;;  %v715_v24 = vand.u32 4294901760, %v714_v9  ;;  %v3564_v30 = vand.u32 4294901760, %v3072_v16 }
  0x45   :  { %v3561_v47 = vand.u32 4294901760, %v3080_v20  ;;  %v2614_v9 = vpack.c.bf16 %v3014_v39, %v3010_v36  ;;  %v2629_v35 = vpack.c.bf16 %v3080_v20, %v3078_v19  ;;  %v3583_v36 = vand.u32 4294901760, %v3068_v14 }
  0x46   :  { %v722_v27 = vand.u32 4294901760, %v721_v23  ;;  %v728_v34 = vsub.f32 %v3072_v16, %v3564_v30  ;;  %v2617_v23 = vpack.c.bf16 %v3047_v54, %v3045_v53  ;;  %v3584_v39 = vand.u32 4294901760, %v3070_v15 }
  0x47   :  { %2564 = vmatpush3.bf16.msra.mxu1 %v3031_v44  ;;  %v749_v56 = vsub.f32 %v3080_v20, %v3561_v47  ;;  %v3586_v54 = vand.u32 4294901760, %v3074_v17 }
  0x48   :  { %2565 = vmatprep.subr.bf16.mxu1 %v2939_v0  ;;  %v2599_v32 = vpack.c.bf16 %v722_v27, %v715_v24  ;;  %v729_v41 = vand.u32 4294901760, %v728_v34  ;;  %v2620_v24 = vpack.c.bf16 %v3066_v13, %v3064_v12  ;;  %v2623_v27 = vpack.c.bf16 %v3070_v15, %v3068_v14  ;;  %v71_v15 = vld [vmem:[#allocation4 + $0xf8] sm:$0xff] }
  0x49   :  { %v750_v63 = vand.u32 4294901760, %v749_v56  ;;  %v2626_v34 = vpack.c.bf16 %v3074_v17, %v3072_v16  ;;  %v72_v17 = vld [vmem:[#allocation4 + $0x100] sm:$0xff] }
  0x4a   :  { %v2602_v52 = vpack.c.bf16 %v736_v42, %v729_v41 }
  0x4b   :  { %2567 = vmatpush3.bf16.msra.mxu1 %v3037_v45  ;;  %v2605_v2 = vpack.c.bf16 %v750_v63, %v743_v58 }
  0x4c   :  { %2568 = vmatprep.subr.bf16.mxu1 %v2939_v0 }
  0x4f   :  { %2570 = vmatpush3.bf16.msra.mxu1 %v3042_v50 }
  0x50   :  { %2571 = vmatprep.subr.bf16.mxu1 %v2939_v0 }
  0x53   :  { %2573 = vmatpush3.bf16.msra.mxu1 %v3050_v57 }
  0x54   :  { %2574 = vmatprep.subr.bf16.mxu1 %v2939_v0 }
  0x57   :  { %2576 = vmatpush3.bf16.msra.mxu1 %v3054_v62 }
  0x58   :  { %2577 = vmatprep.subr.bf16.mxu1 %v2939_v0 }
  0x5b   :  { %2579 = vmatpush3.bf16.msra.mxu1 %v3058_v5 }
  0x5c   :  { %2580 = vmatprep.subr.bf16.mxu1 %v2939_v0 }
  0x5f   :  { %2582 = vmatpush3.bf16.msra.mxu1 %v3076_v18 }
  0x60   :  { %2583 = vmatprep.subr.bf16.mxu1 %v2939_v0 }
 0x111   :  { %v540_v41 = vpop.f32.mrb[0].mxu0 }
 0x112   :  { %v2120_v42 = vpop.f32.mrb[1].mxu0 }
 0x113   :  { %v65_v42 = vld [vmem:[#allocation4 + $0xc8] sm:$0xff] }
 0x115   :  { %v315_v56 = vpop.f32.mrb[0].mxu1 }
 0x116   :  { %v2847_v58 = vadd.f32 %v1854_v55, %v315_v56  ;;  %v2099_v63 = vpop.f32.mrb[1].mxu1  ;;  %v66_v55 = vld [vmem:[#allocation4 + $0xd0] sm:$0xff] }
 0x118   :  { %v2848_v47 = vadd.f32 %v2847_v58, %v540_v41  ;;  %v64_v41 = vld [vmem:[#allocation4 + $0xc0] sm:$0xff] }
 0x11a   :  { %v544_v46 = vmax.f32 %v2848_v47, 0.0 }
 0x11c   :  { %v3166_v31 = vand.u32 4294901760, %v544_v46 }
 0x11e   :  { %v3169_v30 = vsub.f32 %v544_v46, %v3166_v31  ;;  %v63_v46 = vld [vmem:[#allocation4 + $0xb8] sm:$0xff] }
 0x120   :  { %v632_v7 = vand.u32 4294901760, %v3169_v30 }
 0x122   :  { %v633_v6 = vsub.f32 %v3169_v30, %v632_v7 }
 0x124   :  { %v634_v60 = vand.u32 4294901760, %v633_v6  ;;  %v61_v6 = vld [vmem:[#allocation4 + $0xa8] sm:$0xff] }
 0x125   :  { %v1205_v47 = vand.u32 4294901760, %v61_v6 }
 0x126   :  { %2154 = vmatmul.mubr.f32.vlgmr.msra.gmra.mrb[2].mxu1 %v634_v60 }
 0x127   :  { %2585 = vmatpush3.bf16.msra.mxu1 %v3098_v33  ;;  %2188 = vmatprep.mubr.msk.f32.mxu1 %vm2940_vm0, %v2941_v1  ;;  %v58_v33 = vld [vmem:[#allocation4 + $0x90] sm:$0xff]  ;;  %v3201_v48 = vsub.f32 %v61_v6, %v1205_v47 }
 0x128   :  { %2586 = vmatprep.subr.bf16.mxu1 %v2939_v0  ;;  %v1196_v60 = vand.u32 4294901760, %v58_v33 }
 0x12b   :  { %2588 = vmatpush3.bf16.msra.mxu1 %v3102_v40  ;;  %v59_v40 = vld [vmem:[#allocation4 + $0x98] sm:$0xff] }
 0x12c   :  { %2589 = vmatprep.subr.bf16.mxu1 %v2939_v0 }
 0x12f   :  { %2591 = vmatpush3.bf16.msra.mxu1 %v2590_v51  ;;  %v60_v51 = vld [vmem:[#allocation4 + $0xa0] sm:$0xff] }
 0x130   :  { %2592 = vmatprep.subr.bf16.mxu1 %v2939_v0 }
 0x133   :  { %2594 = vmatpush3.bf16.msra.mxu1 %v2593_v61  ;;  %v1199_v61 = vand.u32 4294901760, %v59_v40 }
 0x134   :  { %2595 = vmatprep.subr.bf16.mxu1 %v2939_v0 }
 0x135   :  { %v3191_v56 = vpack.c.bf16 %v1199_v61, %v1196_v60  ;;  %v3195_v58 = vsub.f32 %v59_v40, %v1199_v61  ;;  %v1217_v40 = vand.u32 4294901760, %v65_v42 }
 0x137   :  { %2597 = vmatpush3.bf16.msra.mxu1 %v2596_v8  ;;  %v1202_v8 = vand.u32 4294901760, %v60_v51  ;;  %2705 = vmatpush3.bf16.msra.mxu0 %v3191_v56  ;;  %v3215_v6 = vsub.f32 %v65_v42, %v1217_v40 }
 0x138   :  { %2598 = vmatprep.subr.bf16.mxu1 %v2939_v0  ;;  %2706 = vmatprep.subr.bf16.mxu0 %v2939_v0 }
 0x139   :  { %v3197_v63 = vsub.f32 %v60_v51, %v1202_v8  ;;  %v3199_v49 = vpack.c.bf16 %v1205_v47, %v1202_v8  ;;  %v1223_v51 = vand.u32 4294901760, %v67_v59 }
 0x13b   :  { %2600 = vmatpush3.bf16.msra.mxu1 %v2599_v32  ;;  %v62_v32 = vld [vmem:[#allocation4 + $0xb0] sm:$0xff]  ;;  %2708 = vmatpush3.bf16.msra.mxu0 %v3199_v49 }
 0x13c   :  { %2601 = vmatprep.subr.bf16.mxu1 %v2939_v0  ;;  %2709 = vmatprep.subr.bf16.mxu0 %v2939_v0 }
 0x13f   :  { %2603 = vmatpush3.bf16.msra.mxu1 %v2602_v52  ;;  %v1208_v52 = vand.u32 4294901760, %v62_v32 }
 0x140   :  { %2604 = vmatprep.subr.bf16.mxu1 %v2939_v0 }
 0x141   :  { %v3203_v38 = vsub.f32 %v62_v32, %v1208_v52  ;;  %v3219_v32 = vsub.f32 %v67_v59, %v1223_v51 }
 0x143   :  { %2606 = vmatpush3.bf16.msra.mxu1 %v2605_v2  ;;  %v1211_v2 = vand.u32 4294901760, %v63_v46 }
 0x144   :  { %2607 = vmatprep.subr.bf16.mxu1 %v2939_v0 }
 0x145   :  { %v3209_v37 = vsub.f32 %v63_v46, %v1211_v2 }
 0x146   :  { %2189 = vmatmul.mubr.f32.vlgmr.msra.gmra.mrb[2].mxu1 %v3166_v31 }
 0x147   :  { %2609 = vmatpush3.bf16.msra.mxu1 %v2608_v3  ;;  %2223 = vmatprep.mubr.msk.f32.mxu1 %vm2940_vm0, %v2941_v1  ;;  %v3193_v3 = vsub.f32 %v58_v33, %v1196_v60  ;;  %v1214_v33 = vand.u32 4294901760, %v64_v41  ;;  %v1220_v60 = vand.u32 4294901760, %v66_v55 }
 0x148   :  { %2610 = vmatprep.subr.bf16.mxu1 %v2939_v0 }
 0x149   :  { %v3213_v61 = vsub.f32 %v64_v41, %v1214_v33  ;;  %v3217_v8 = vsub.f32 %v66_v55, %v1220_v60  ;;  %v3233_v59 = vpack.c.bf16 %v1217_v40, %v1214_v33 }
 0x14b   :  { %2612 = vmatpush3.bf16.msra.mxu1 %v2611_v4  ;;  %v3225_v4 = vpack.c.bf16 %v1211_v2, %v1208_v52 }
 0x14c   :  { %2613 = vmatprep.subr.bf16.mxu1 %v2939_v0 }
 0x14d   :  { %2711 = vmatpush3.bf16.msra.mxu0 %v3225_v4 }
 0x14e   :  { %2712 = vmatprep.subr.bf16.mxu0 %v2939_v0 }
 0x14f   :  { %2615 = vmatpush3.bf16.msra.mxu1 %v2614_v9  ;;  %v3241_v9 = vpack.c.bf16 %v1223_v51, %v1220_v60 }
 0x150   :  { %2616 = vmatprep.subr.bf16.mxu1 %v2939_v0 }
 0x151   :  { %2714 = vmatpush3.bf16.msra.mxu0 %v3233_v59 }
 0x152   :  { %2715 = vmatprep.subr.bf16.mxu0 %v2939_v0 }
 0x153   :  { %2618 = vmatpush3.bf16.msra.mxu1 %v2617_v23  ;;  %v2656_v23 = vpack.c.bf16 %v650_v11, %v643_v10  ;;  %v2662_v10 = vpack.c.bf16 %v3578_v22, %v3577_v21  ;;  %v3579_v11 = vand.u32 4294901760, %v3045_v53  ;;  %v3585_v53 = vand.u32 4294901760, %v3072_v16 }
 0x154   :  { %2619 = vmatprep.subr.bf16.mxu1 %v2939_v0  ;;  %v1235_v16 = vand.u32 4294901760, %v71_v15 }
 0x155   :  { %2717 = vmatpush3.bf16.msra.mxu0 %v3241_v9  ;;  %v2665_v29 = vpack.c.bf16 %v3580_v28, %v3579_v11  ;;  %v1317_v11 = vand.u32 4294901760, %v3203_v38  ;;  %v1324_v28 = vand.u32 4294901760, %v3209_v37 }
 0x156   :  { %2718 = vmatprep.subr.bf16.mxu0 %v2939_v0  ;;  %v3365_v55 = vsub.f32 %v71_v15, %v1235_v16 }
 0x157   :  { %2621 = vmatpush3.bf16.msra.mxu1 %v2620_v24  ;;  %v2659_v24 = vpack.c.bf16 %v664_v26, %v657_v25  ;;  %v3581_v25 = vand.u32 4294901760, %v3064_v12  ;;  %v3582_v26 = vand.u32 4294901760, %v3066_v13  ;;  %v3587_v12 = vand.u32 4294901760, %v3078_v19 }
 0x158   :  { %2622 = vmatprep.subr.bf16.mxu1 %v2939_v0  ;;  %v3588_v13 = vand.u32 4294901760, %v3080_v20  ;;  %v1238_v19 = vand.u32 4294901760, %v72_v17 }
 0x15a   :  { %v3368_v33 = vsub.f32 %v72_v17, %v1238_v19 }
 0x15b   :  { %2624 = vmatpush3.bf16.msra.mxu1 %v2623_v27  ;;  %v2674_v27 = vpack.c.bf16 %v3586_v54, %v3585_v53  ;;  %v1331_v53 = vand.u32 4294901760, %v3213_v61  ;;  %v1338_v54 = vand.u32 4294901760, %v3215_v6 }
 0x15c   :  { %2625 = vmatprep.subr.bf16.mxu1 %v2939_v0 }
 0x15f   :  { %2627 = vmatpush3.bf16.msra.mxu1 %v2626_v34  ;;  %v2677_v34 = vpack.c.bf16 %v3588_v13, %v3587_v12  ;;  %v1332_v12 = vsub.f32 %v3213_v61, %v1331_v53  ;;  %v1339_v13 = vsub.f32 %v3215_v6, %v1338_v54 }
 0x160   :  { %2628 = vmatprep.subr.bf16.mxu1 %v2939_v0 }
 0x163   :  { %2630 = vmatpush3.bf16.msra.mxu1 %v2629_v35  ;;  %v1296_v35 = vand.u32 4294901760, %v3195_v58 }
 0x164   :  { %2631 = vmatprep.subr.bf16.mxu1 %v2939_v0 }
 0x165   :  { %v1297_v52 = vsub.f32 %v3195_v58, %v1296_v35 }
 0x166   :  { %2224 = vmatmul.mubr.f32.vlgmr.msra.gmra.mrb[2].mxu1 %v3169_v30  ;;  %v2671_v30 = vpack.c.bf16 %v3584_v39, %v3583_v36 }
 0x167   :  { %2633 = vmatpush3.bf16.msra.mxu1 %v3026_v43  ;;  %2258 = vmatprep.mubr.msk.f32.mxu1 %vm2940_vm0, %v2941_v1  ;;  %v1298_v51 = vand.u32 4294901760, %v1297_v52 }
 0x168   :  { %2634 = vmatprep.subr.bf16.mxu1 %v2939_v0 }
 0x16b   :  { %2636 = vmatpush3.bf16.msra.mxu1 %v3031_v44 }
 0x16c   :  { %2637 = vmatprep.subr.bf16.mxu1 %v2939_v0 }
 0x16f   :  { %2639 = vmatpush3.bf16.msra.mxu1 %v3037_v45 }
 0x170   :  { %2640 = vmatprep.subr.bf16.mxu1 %v2939_v0 }
 0x173   :  { %2642 = vmatpush3.bf16.msra.mxu1 %v3042_v50 }
 0x174   :  { %2643 = vmatprep.subr.bf16.mxu1 %v2939_v0 }
 0x177   :  { %2645 = vmatpush3.bf16.msra.mxu1 %v3050_v57 }
 0x178   :  { %2646 = vmatprep.subr.bf16.mxu1 %v2939_v0 }
 0x17b   :  { %2648 = vmatpush3.bf16.msra.mxu1 %v3054_v62 }
 0x17c   :  { %2649 = vmatprep.subr.bf16.mxu1 %v2939_v0 }
 0x17f   :  { %2651 = vmatpush3.bf16.msra.mxu1 %v3058_v5 }
 0x180   :  { %2652 = vmatprep.subr.bf16.mxu1 %v2939_v0 }
 0x183   :  { %2654 = vmatpush3.bf16.msra.mxu1 %v3076_v18 }
 0x184   :  { %2655 = vmatprep.subr.bf16.mxu1 %v2939_v0 }
 0x186   :  { %2259 = vmatmul.mubr.f32.vlgmr.msra.gmra.mrb[2].mxu1 %v632_v7  ;;  %v2668_v7 = vpack.c.bf16 %v3582_v26, %v3581_v25  ;;  %v1318_v26 = vsub.f32 %v3203_v38, %v1317_v11 }
 0x187   :  { %2657 = vmatpush3.bf16.msra.mxu1 %v2656_v23  ;;  %2293 = vmatprep.mubr.msk.f32.mxu1 %vm2940_vm0, %v2941_v1  ;;  %v1303_v23 = vand.u32 4294901760, %v3197_v63 }
 0x188   :  { %2658 = vmatprep.subr.bf16.mxu1 %v2939_v0  ;;  %v1319_v39 = vand.u32 4294901760, %v1318_v26 }
 0x189   :  { %v1304_v22 = vsub.f32 %v3197_v63, %v1303_v23 }
 0x18b   :  { %2660 = vmatpush3.bf16.msra.mxu1 %v2659_v24  ;;  %v1310_v24 = vand.u32 4294901760, %v3201_v48 }
 0x18c   :  { %2661 = vmatprep.subr.bf16.mxu1 %v2939_v0 }
 0x18f   :  { %2663 = vmatpush3.bf16.msra.mxu1 %v2662_v10  ;;  %v1311_v10 = vsub.f32 %v3201_v48, %v1310_v24 }
 0x190   :  { %2664 = vmatprep.subr.bf16.mxu1 %v2939_v0 }
 0x191   :  { %v1312_v25 = vand.u32 4294901760, %v1311_v10 }
 0x193   :  { %2666 = vmatpush3.bf16.msra.mxu1 %v2665_v29  ;;  %v1305_v29 = vand.u32 4294901760, %v1304_v22  ;;  %v3575_v22 = vand.u32 4294901760, %v3365_v55 }
 0x194   :  { %2667 = vmatprep.subr.bf16.mxu1 %v2939_v0 }
 0x195   :  { %v2731_v36 = vpack.c.bf16 %v1312_v25, %v1305_v29  ;;  %v1381_v25 = vsub.f32 %v3365_v55, %v3575_v22 }
 0x197   :  { %2669 = vmatpush3.bf16.msra.mxu1 %v2668_v7  ;;  %v1325_v7 = vsub.f32 %v3209_v37, %v1324_v28 }
 0x198   :  { %2670 = vmatprep.subr.bf16.mxu1 %v2939_v0 }
 0x19b   :  { %2672 = vmatpush3.bf16.msra.mxu1 %v2671_v30  ;;  %v1326_v30 = vand.u32 4294901760, %v1325_v7  ;;  %v1382_v7 = vand.u32 4294901760, %v1381_v25 }
 0x19c   :  { %2673 = vmatprep.subr.bf16.mxu1 %v2939_v0 }
 0x19f   :  { %2675 = vmatpush3.bf16.msra.mxu1 %v2674_v27  ;;  %v2734_v27 = vpack.c.bf16 %v1326_v30, %v1319_v39  ;;  %v3574_v39 = vand.u32 4294901760, %v3368_v33 }
 0x1a0   :  { %2676 = vmatprep.subr.bf16.mxu1 %v2939_v0 }
 0x1a3   :  { %2678 = vmatpush3.bf16.msra.mxu1 %v2677_v34  ;;  %v1333_v34 = vand.u32 4294901760, %v1332_v12 }
 0x1a4   :  { %2679 = vmatprep.subr.bf16.mxu1 %v2939_v0 }
 0x1a6   :  { %2294 = vmatmul.mubr.f32.vlgmr.msra.gmra.mrb[2].mxu1 %v3166_v31 }
 0x1a7   :  { %2681 = vmatpush3.bf16.msra.mxu1 %v3026_v43  ;;  %2328 = vmatprep.mubr.msk.f32.mxu1 %vm2940_vm0, %v2941_v1  ;;  %v68_v43 = vld [vmem:[#allocation4 + $0xe0] sm:$0xff] }
 0x1a8   :  { %2682 = vmatprep.subr.bf16.mxu1 %v2939_v0 }
 0x1ab   :  { %2684 = vmatpush3.bf16.msra.mxu1 %v3031_v44  ;;  %v69_v44 = vld [vmem:[#allocation4 + $0xe8] sm:$0xff] }
 0x1ac   :  { %2685 = vmatprep.subr.bf16.mxu1 %v2939_v0 }
 0x1af   :  { %2687 = vmatpush3.bf16.msra.mxu1 %v3037_v45  ;;  %v1226_v45 = vand.u32 4294901760, %v68_v43 }
 0x1b0   :  { %2688 = vmatprep.subr.bf16.mxu1 %v2939_v0 }
 0x1b1   :  { %v3359_v2 = vsub.f32 %v68_v43, %v1226_v45  ;;  %v1340_v43 = vand.u32 4294901760, %v1339_v13  ;;  %v1388_v13 = vsub.f32 %v3368_v33, %v3574_v39 }
 0x1b3   :  { %2690 = vmatpush3.bf16.msra.mxu1 %v3042_v50  ;;  %v1229_v50 = vand.u32 4294901760, %v69_v44  ;;  %v1359_v17 = vand.u32 4294901760, %v3359_v2 }
 0x1b4   :  { %2691 = vmatprep.subr.bf16.mxu1 %v2939_v0 }
 0x1b5   :  { %v3341_v14 = vpack.c.bf16 %v1229_v50, %v1226_v45  ;;  %v3361_v41 = vsub.f32 %v69_v44, %v1229_v50  ;;  %v1345_v44 = vand.u32 4294901760, %v3217_v8  ;;  %v1352_v45 = vand.u32 4294901760, %v3219_v32 }
 0x1b6   :  { %v2737_v50 = vpack.c.bf16 %v1340_v43, %v1333_v34  ;;  %v1389_v43 = vand.u32 4294901760, %v1388_v13 }
 0x1b7   :  { %2693 = vmatpush3.bf16.msra.mxu1 %v3050_v57  ;;  %v70_v57 = vld [vmem:[#allocation4 + $0xf0] sm:$0xff]  ;;  %2720 = vmatpush3.bf16.msra.mxu0 %v3341_v14  ;;  %v1353_v15 = vsub.f32 %v3219_v32, %v1352_v45 }
 0x1b8   :  { %2694 = vmatprep.subr.bf16.mxu1 %v2939_v0  ;;  %2721 = vmatprep.subr.bf16.mxu0 %v2939_v0 }
 0x1bb   :  { %2696 = vmatpush3.bf16.msra.mxu1 %v3054_v62  ;;  %v1232_v62 = vand.u32 4294901760, %v70_v57 }
 0x1bc   :  { %2697 = vmatprep.subr.bf16.mxu1 %v2939_v0 }
 0x1bd   :  { %v3363_v42 = vsub.f32 %v70_v57, %v1232_v62  ;;  %v1346_v57 = vsub.f32 %v3217_v8, %v1345_v44 }
 0x1bf   :  { %2699 = vmatpush3.bf16.msra.mxu1 %v3058_v5  ;;  %v3345_v5 = vpack.c.bf16 %v1235_v16, %v1232_v62  ;;  %v1347_v62 = vand.u32 4294901760, %v1346_v57  ;;  %v1354_v16 = vand.u32 4294901760, %v1353_v15 }
 0x1c0   :  { %2700 = vmatprep.subr.bf16.mxu1 %v2939_v0 }
 0x1c1   :  { %2723 = vmatpush3.bf16.msra.mxu0 %v3345_v5 }
 0x1c2   :  { %2724 = vmatprep.subr.bf16.mxu0 %v2939_v0 }
 0x1c3   :  { %2702 = vmatpush3.bf16.msra.mxu1 %v3076_v18  ;;  %v73_v18 = vld [vmem:[#allocation4 + $0x108] sm:$0xff] }
 0x1c4   :  { %v1241_v20 = vand.u32 4294901760, %v73_v18 }
 0x1c6   :  { %2329 = vmatmul.mubr.f32.vlgmr.msra.gmra.mrb[2].mxu1 %v3166_v31  ;;  %v1289_v31 = vand.u32 4294901760, %v3193_v3  ;;  %v3351_v46 = vpack.c.bf16 %v1241_v20, %v1238_v19  ;;  %v3370_v40 = vsub.f32 %v73_v18, %v1241_v20  ;;  %v1366_v18 = vand.u32 4294901760, %v3361_v41 }
 0x1c7   :  { %v2740_v19 = vpack.c.bf16 %v1354_v16, %v1347_v62  ;;  %v1360_v20 = vsub.f32 %v3359_v2, %v1359_v17  ;;  %v2752_v62 = vpack.c.bf16 %v3195_v58, %v3193_v3  ;;  %v2755_v16 = vpack.c.bf16 %v3201_v48, %v3197_v63 }
 0x1c8   :  { %v1290_v47 = vsub.f32 %v3193_v3, %v1289_v31  ;;  %2726 = vmatpush3.bf16.msra.mxu0 %v3351_v46  ;;  %v3573_v30 = vand.u32 4294901760, %v3370_v40  ;;  %v2773_v25 = vpack.c.bf16 %v3370_v40, %v3368_v33  ;;  %v2806_v3 = vpack.c.bf16 %v1324_v28, %v1317_v11 }
 0x1c9   :  { %2727 = vmatprep.subr.bf16.mxu0 %v2939_v0  ;;  %v1361_v52 = vand.u32 4294901760, %v1360_v20  ;;  %v2758_v20 = vpack.c.bf16 %v3209_v37, %v3203_v38  ;;  %v2809_v48 = vpack.c.bf16 %v1338_v54, %v1331_v53  ;;  %v2812_v58 = vpack.c.bf16 %v1352_v45, %v1345_v44 }
 0x1ca   :  { %v1291_v60 = vand.u32 4294901760, %v1290_v47  ;;  %v1367_v47 = vsub.f32 %v3361_v41, %v1366_v18  ;;  %v1395_v34 = vsub.f32 %v3370_v40, %v3573_v30  ;;  %v2815_v37 = vpack.c.bf16 %v1366_v18, %v1359_v17 }
 0x1cb   :  { %v3589_v38 = vand.u32 4294901760, %v3363_v42  ;;  %v3590_v63 = vand.u32 4294901760, %v3365_v55 }
 0x1cc   :  { %v3375_v21 = vpack.c.bf16 %v1298_v51, %v1291_v60  ;;  %v1368_v60 = vand.u32 4294901760, %v1367_v47  ;;  %v3576_v51 = vand.u32 4294901760, %v3363_v42  ;;  %v1396_v57 = vand.u32 4294901760, %v1395_v34 }
 0x1cd   :  { %v2761_v47 = vpack.c.bf16 %v3215_v6, %v3213_v61  ;;  %v2818_v61 = vpack.c.bf16 %v3590_v63, %v3589_v38  ;;  %v3591_v6 = vand.u32 4294901760, %v3368_v33 }
 0x1ce   :  { %v2743_v10 = vpack.c.bf16 %v1368_v60, %v1361_v52  ;;  %v1374_v29 = vsub.f32 %v3363_v42, %v3576_v51  ;;  %v2749_v15 = vpack.c.bf16 %v1396_v57, %v1389_v43  ;;  %v2764_v52 = vpack.c.bf16 %v3219_v32, %v3217_v8 }
 0x1cf   :  { %v2767_v60 = vpack.c.bf16 %v3361_v41, %v3359_v2  ;;  %v3592_v8 = vand.u32 4294901760, %v3370_v40 }
 0x1d0   :  { %v1375_v26 = vand.u32 4294901760, %v1374_v29  ;;  %v2770_v29 = vpack.c.bf16 %v3365_v55, %v3363_v42 }
 0x1d1   :  { %v2821_v32 = vpack.c.bf16 %v3592_v8, %v3591_v6 }
 0x1d2   :  { %v2746_v12 = vpack.c.bf16 %v1382_v7, %v1375_v26  ;;  %v1855_v26 = vld [vmem:[#allocation4 + $0x111] ss:$0 sm:$0xff] }
 0x299   :  { %v1186_v7 = vpop.f32.mrb[2].mxu1 }
 0x29a   :  { %v2849_v13 = vadd.f32 %v1855_v26, %v1186_v7  ;;  %v2330_v34 = vpop.f32.mrb[3].mxu1 }
 0x29c   :  { %v1190_v43 = vmax.f32 %v2849_v13, 0.0 }
 0x29e   :  { %v3447_v57 = vand.u32 4294901760, %v1190_v43 }
 0x2a0   :  { %v1277_v30 = vsub.f32 %v1190_v43, %v3447_v57 }
 0x2a2   :  { %v1278_v39 = vand.u32 4294901760, %v1277_v30 }
 0x2a4   :  { %v1279_v22 = vsub.f32 %v1277_v30, %v1278_v39 }
 0x2a6   :  { %v1280_v51 = vand.u32 4294901760, %v1279_v22 }
 0x2a8   :  { %2364 = vmatmul.mubr.f32.vlgmr.msra.gmra.mrb[2].mxu0 %v1280_v51 }
 0x2a9   :  { %2729 = vmatpush3.bf16.msra.mxu0 %v3375_v21  ;;  %2398 = vmatprep.mubr.msk.f32.mxu0 %vm2940_vm0, %v2941_v1  ;;  %v2800_v21 = vpack.c.bf16 %v1296_v35, %v1289_v31 }
 0x2aa   :  { %2730 = vmatprep.subr.bf16.mxu0 %v2939_v0 }
 0x2ad   :  { %2732 = vmatpush3.bf16.msra.mxu0 %v2731_v36  ;;  %v2803_v36 = vpack.c.bf16 %v1310_v24, %v1303_v23 }
 0x2ae   :  { %2733 = vmatprep.subr.bf16.mxu0 %v2939_v0 }
 0x2b1   :  { %2735 = vmatpush3.bf16.msra.mxu0 %v2734_v27 }
 0x2b2   :  { %2736 = vmatprep.subr.bf16.mxu0 %v2939_v0 }
 0x2b5   :  { %2738 = vmatpush3.bf16.msra.mxu0 %v2737_v50 }
 0x2b6   :  { %2739 = vmatprep.subr.bf16.mxu0 %v2939_v0 }
 0x2b9   :  { %2741 = vmatpush3.bf16.msra.mxu0 %v2740_v19 }
 0x2ba   :  { %2742 = vmatprep.subr.bf16.mxu0 %v2939_v0 }
 0x2bd   :  { %2744 = vmatpush3.bf16.msra.mxu0 %v2743_v10 }
 0x2be   :  { %2745 = vmatprep.subr.bf16.mxu0 %v2939_v0 }
 0x2c1   :  { %2747 = vmatpush3.bf16.msra.mxu0 %v2746_v12 }
 0x2c2   :  { %2748 = vmatprep.subr.bf16.mxu0 %v2939_v0 }
 0x2c5   :  { %2750 = vmatpush3.bf16.msra.mxu0 %v2749_v15 }
 0x2c6   :  { %2751 = vmatprep.subr.bf16.mxu0 %v2939_v0 }
 0x2c8   :  { %2399 = vmatmul.mubr.f32.vlgmr.msra.gmra.mrb[2].mxu0 %v3447_v57 }
 0x2c9   :  { %2753 = vmatpush3.bf16.msra.mxu0 %v2752_v62  ;;  %2433 = vmatprep.mubr.msk.f32.mxu0 %vm2940_vm0, %v2941_v1 }
 0x2ca   :  { %2754 = vmatprep.subr.bf16.mxu0 %v2939_v0 }
 0x2cd   :  { %2756 = vmatpush3.bf16.msra.mxu0 %v2755_v16 }
 0x2ce   :  { %2757 = vmatprep.subr.bf16.mxu0 %v2939_v0 }
 0x2d1   :  { %2759 = vmatpush3.bf16.msra.mxu0 %v2758_v20 }
 0x2d2   :  { %2760 = vmatprep.subr.bf16.mxu0 %v2939_v0 }
 0x2d5   :  { %2762 = vmatpush3.bf16.msra.mxu0 %v2761_v47 }
 0x2d6   :  { %2763 = vmatprep.subr.bf16.mxu0 %v2939_v0 }
 0x2d9   :  { %2765 = vmatpush3.bf16.msra.mxu0 %v2764_v52 }
 0x2da   :  { %2766 = vmatprep.subr.bf16.mxu0 %v2939_v0 }
 0x2dd   :  { %2768 = vmatpush3.bf16.msra.mxu0 %v2767_v60 }
 0x2de   :  { %2769 = vmatprep.subr.bf16.mxu0 %v2939_v0 }
 0x2e1   :  { %2771 = vmatpush3.bf16.msra.mxu0 %v2770_v29 }
 0x2e2   :  { %2772 = vmatprep.subr.bf16.mxu0 %v2939_v0 }
 0x2e5   :  { %2774 = vmatpush3.bf16.msra.mxu0 %v2773_v25 }
 0x2e6   :  { %2775 = vmatprep.subr.bf16.mxu0 %v2939_v0 }
 0x2e8   :  { %2434 = vmatmul.mubr.f32.vlgmr.msra.gmra.mrb[2].mxu0 %v1277_v30 }
 0x2e9   :  { %2777 = vmatpush3.bf16.msra.mxu0 %v3191_v56  ;;  %2468 = vmatprep.mubr.msk.f32.mxu0 %vm2940_vm0, %v2941_v1 }
 0x2ea   :  { %2778 = vmatprep.subr.bf16.mxu0 %v2939_v0 }
 0x2ed   :  { %2780 = vmatpush3.bf16.msra.mxu0 %v3199_v49 }
 0x2ee   :  { %2781 = vmatprep.subr.bf16.mxu0 %v2939_v0 }
 0x2f1   :  { %2783 = vmatpush3.bf16.msra.mxu0 %v3225_v4 }
 0x2f2   :  { %2784 = vmatprep.subr.bf16.mxu0 %v2939_v0 }
 0x2f5   :  { %2786 = vmatpush3.bf16.msra.mxu0 %v3233_v59 }
 0x2f6   :  { %2787 = vmatprep.subr.bf16.mxu0 %v2939_v0 }
 0x2f9   :  { %2789 = vmatpush3.bf16.msra.mxu0 %v3241_v9 }
 0x2fa   :  { %2790 = vmatprep.subr.bf16.mxu0 %v2939_v0 }
 0x2fd   :  { %2792 = vmatpush3.bf16.msra.mxu0 %v3341_v14 }
 0x2fe   :  { %2793 = vmatprep.subr.bf16.mxu0 %v2939_v0 }
 0x301   :  { %2795 = vmatpush3.bf16.msra.mxu0 %v3345_v5 }
 0x302   :  { %2796 = vmatprep.subr.bf16.mxu0 %v2939_v0 }
 0x305   :  { %2798 = vmatpush3.bf16.msra.mxu0 %v3351_v46 }
 0x306   :  { %2799 = vmatprep.subr.bf16.mxu0 %v2939_v0 }
 0x308   :  { %2469 = vmatmul.mubr.f32.vlgmr.msra.gmra.mrb[2].mxu0 %v1278_v39 }
 0x309   :  { %2801 = vmatpush3.bf16.msra.mxu0 %v2800_v21  ;;  %2503 = vmatprep.mubr.msk.f32.mxu0 %vm2940_vm0, %v2941_v1 }
 0x30a   :  { %2802 = vmatprep.subr.bf16.mxu0 %v2939_v0 }
 0x30d   :  { %2804 = vmatpush3.bf16.msra.mxu0 %v2803_v36 }
 0x30e   :  { %2805 = vmatprep.subr.bf16.mxu0 %v2939_v0 }
 0x311   :  { %2807 = vmatpush3.bf16.msra.mxu0 %v2806_v3 }
 0x312   :  { %2808 = vmatprep.subr.bf16.mxu0 %v2939_v0 }
 0x315   :  { %2810 = vmatpush3.bf16.msra.mxu0 %v2809_v48 }
 0x316   :  { %2811 = vmatprep.subr.bf16.mxu0 %v2939_v0 }
 0x319   :  { %2813 = vmatpush3.bf16.msra.mxu0 %v2812_v58 }
 0x31a   :  { %2814 = vmatprep.subr.bf16.mxu0 %v2939_v0 }
 0x31d   :  { %2816 = vmatpush3.bf16.msra.mxu0 %v2815_v37 }
 0x31e   :  { %2817 = vmatprep.subr.bf16.mxu0 %v2939_v0 }
 0x321   :  { %2819 = vmatpush3.bf16.msra.mxu0 %v2818_v61 }
 0x322   :  { %2820 = vmatprep.subr.bf16.mxu0 %v2939_v0 }
 0x325   :  { %2822 = vmatpush3.bf16.msra.mxu0 %v2821_v32 }
 0x326   :  { %2823 = vmatprep.subr.bf16.mxu0 %v2939_v0 }
 0x328   :  { %2504 = vmatmul.mubr.f32.vlgmr.msra.gmra.mrb[2].mxu0 %v3447_v57 }
 0x329   :  { %2825 = vmatpush3.bf16.msra.mxu0 %v3191_v56  ;;  %2538 = vmatprep.mubr.msk.f32.mxu0 %vm2940_vm0, %v2941_v1  ;;  %v1856_v1 = vld [vmem:[#allocation4 + $0x112] ss:$0 sm:$0xff] }
 0x32a   :  { %2826 = vmatprep.subr.bf16.mxu0 %v2939_v0 }
 0x32d   :  { %2828 = vmatpush3.bf16.msra.mxu0 %v3199_v49 }
 0x32e   :  { %2829 = vmatprep.subr.bf16.mxu0 %v2939_v0 }
 0x331   :  { %2831 = vmatpush3.bf16.msra.mxu0 %v3225_v4 }
 0x332   :  { %2832 = vmatprep.subr.bf16.mxu0 %v2939_v0 }
 0x335   :  { %2834 = vmatpush3.bf16.msra.mxu0 %v3233_v59 }
 0x336   :  { %2835 = vmatprep.subr.bf16.mxu0 %v2939_v0 }
 0x339   :  { %2837 = vmatpush3.bf16.msra.mxu0 %v3241_v9 }
 0x33a   :  { %2838 = vmatprep.subr.bf16.mxu0 %v2939_v0 }
 0x33d   :  { %2840 = vmatpush3.bf16.msra.mxu0 %v3341_v14 }
 0x33e   :  { %2841 = vmatprep.subr.bf16.mxu0 %v2939_v0 }
 0x341   :  { %2843 = vmatpush3.bf16.msra.mxu0 %v3345_v5 }
 0x342   :  { %2844 = vmatprep.subr.bf16.mxu0 %v2939_v0 }
 0x345   :  { %2846 = vmatpush3.bf16.msra.mxu0 %v3351_v46 }
 0x348   :  { %2539 = vmatmul.mubr.f32.vlgmr.msra.gmra.mrb[2].mxu0 %v3447_v57 }
 0x41b   :  { %v1832_v49 = vpop.f32.mrb[2].mxu0 }
 0x41c   :  { %v2850_v56 = vadd.f32 %v1856_v1, %v1832_v49  ;;  %v2540_v4 = vpop.f32.mrb[3].mxu0 }
 0x41e   :  { %1837 = vst.msk [vmem:[%s3559_s2] sm:$0xff] %vm1836_vm2, %v2850_v56  ;;  %1839 = vrot.lane.b32.xlu0 %v2850_v56, %s2942_s11 }
 0x490   :  { %v1840_v59 = vpop.permute.xlu0 %1839 }
 0x491   :  { %1843 = vst.msk [vmem:[%s3560_s3] sm:$0xff] %vm1842_vm3, %v1840_v59 }
 0x492   :  { %1852 = vsyncpa [#allocation3], 1 }
 0x493   :  { %1853 = vsyncpa [#allocation5], 1 }

</bundles_post_ra>
